<compile_context>
chip_gen: v6e
topology: v6e:2x2x1
jax: 0.10.0
libtpu: 0.0.40
codegen_flags: <defaults>
</compile_context>

<pallas_src>
import functools

import jax
import jax.numpy as jnp
from jax.experimental import pallas as pl
from jax.experimental.pallas import tpu as pltpu


HIDDEN = 24      # matches nn.Linear(state_size, 24)
LANES = 128
SUBLANES = 8


def _round_up(n: int, m: int) -> int:
    return ((n + m - 1) // m) * m


def dqn_mlp_kernel(x_ref, w1_ref, b1_ref, w2_ref, b2_ref, o_ref):
    """Fused 2-layer MLP: relu(relu(x @ W1 + b1) @ W2 + b2).

    Operands arrive pre-packed (block-diagonal weights, lane-dense output), so
    every output store is a full unmasked 128-lane store.  Padded lanes stay
    exactly zero (ReLU(0 + 0) = 0 and zero W2 rows contribute nothing).
    """
    x = x_ref[...]                                                    # (bt, P*S)
    h = jnp.dot(x, w1_ref[...], preferred_element_type=jnp.float32)  # (bt, P*Gh)
    h = jnp.maximum(h + b1_ref[...], 0.0)                            # bias + ReLU (f32 VPU)
    y = jnp.dot(h, w2_ref[...], preferred_element_type=jnp.float32)  # (bt, P*Gf)
    o_ref[...] = jnp.maximum(y + b2_ref[...], 0.0).astype(o_ref.dtype)


def _packing_geometry(hidden: int, features: int):
    """Per-group lane widths (Gh, Gf) and rows-per-128-lane packing factor P."""
    gmax = max(hidden, features)
    if gmax <= LANES:
        g = SUBLANES
        while g < gmax:
            g *= 2
        return g, g, LANES // g
    # Large layers: no row packing, just lane-pad each feature dim independently.
    return _round_up(hidden, LANES), _round_up(features, LANES), 1


@functools.partial(jax.jit, static_argnames=("batch_tile",))
def dqn_forward(x, w1, b1, w2, b2, *, batch_tile=None):
    """DQNModel forward pass via a Pallas TPU kernel.

    x:  (B, state_size) float32
    w1: (state_size, 24)        b1: (24,) or (1, 24)
    w2: (24, feature_size)      b2: (feature_size,) or (1, feature_size)
    Weights are stored pre-transposed (in_features, out_features) so the kernel
    computes y = x @ W + b, matching torch's x @ W.T + b.

    Note: for per-env-step inference (B <= ~32) the fixed pallas_call launch
    overhead dominates; callers on that path may prefer routing to
    reference_forward (plain XLA) or fusing the downstream Q/advantage head
    into this kernel.  That dispatch is left to the caller.
    """
    B, S = x.shape
    H = w1.shape[1]
    F = w2.shape[1]
    Gh, Gf, P = _packing_geometry(H, F)

    # ---- block-diagonal weight packing (bit-exact: only zeros are added) ----
    # TODO(synk): for a long-lived model, hoist this tiny packing step out of the
    # per-call path and cache (w1bd, b1bd, w2bd, b2bd).
    w1g = jnp.pad(w1, ((0, 0), (0, Gh - H)))                 # (S, Gh)
    w2g = jnp.pad(w2, ((0, Gh - H), (0, Gf - F)))            # (Gh, Gf)
    b1g = jnp.pad(b1.reshape(1, H), ((0, 0), (0, Gh - H)))   # (1, Gh)
    b2g = jnp.pad(b2.reshape(1, F), ((0, 0), (0, Gf - F)))   # (1, Gf)
    eye = jnp.eye(P, dtype=w1.dtype)
    w1bd = jnp.kron(eye, w1g)                                # (P*S, P*Gh) block-diagonal
    w2bd = jnp.kron(eye, w2g)                                # (P*Gh, P*Gf) block-diagonal
    b1bd = jnp.tile(b1g, (1, P))                             # (1, P*Gh)
    b2bd = jnp.tile(b2g, (1, P))                             # (1, P*Gf)

    # ---- pack P batch rows per kernel row (free, contiguous reshape) --------
    Bp = _round_up(B, P * SUBLANES)        # alignment only, NOT rounded to a full tile
    if Bp != B:
        x = jnp.pad(x, ((0, Bp - B), (0, 0)))
    Bpk = Bp // P
    xp = x.reshape(Bpk, P * S)

    # ---- batch tile: >= 2 grid steps when possible (v7x megacore), bounded
    # padding waste, and a VMEM footprint safe on every generation -------------
    if batch_tile is None:
        bt = min(256, max(SUBLANES, _round_up(pl.cdiv(Bpk, 2), SUBLANES)))
    else:
        bt = max(SUBLANES, _round_up(max(int(batch_tile), 1) // P, SUBLANES))
        bt = min(bt, 2048)                 # keep multi-buffered tiles <~6 MiB
    Bpk_pad = _round_up(Bpk, bt)
    while bt > SUBLANES and (Bpk_pad - Bpk) * 8 > Bpk:       # >12.5% waste -> shrink tile
        bt = max(SUBLANES, _round_up(bt // 2, SUBLANES))
        Bpk_pad = _round_up(Bpk, bt)
    if Bpk_pad != Bpk:
        xp = jnp.pad(xp, ((0, Bpk_pad - Bpk), (0, 0)))
    grid = (Bpk_pad // bt,)

    if grid[0] >= 3:  # deep enough to benefit from a third buffer on the x stream
        x_spec = pl.BlockSpec((bt, P * S), lambda i: (i, 0),
                              pipeline_mode=pl.Buffered(3))
    else:
        x_spec = pl.BlockSpec((bt, P * S), lambda i: (i, 0))

    out = pl.pallas_call(
        dqn_mlp_kernel,
        out_shape=jax.ShapeDtypeStruct((Bpk_pad, P * Gf), jnp.float32),
        grid_spec=pltpu.PrefetchScalarGridSpec(
            num_scalar_prefetch=0,
            grid=grid,
            in_specs=[
                x_spec,                                             # x tile over batch
                pl.BlockSpec((P * S, P * Gh), lambda i: (0, 0)),    # W1 (block-diag), resident
                pl.BlockSpec((1, P * Gh), lambda i: (0, 0)),        # b1, resident
                pl.BlockSpec((P * Gh, P * Gf), lambda i: (0, 0)),   # W2 (block-diag), resident
                pl.BlockSpec((1, P * Gf), lambda i: (0, 0)),        # b2, resident
            ],
            out_specs=pl.BlockSpec((bt, P * Gf), lambda i: (i, 0)),  # lane-dense, unmasked vst
        ),
        compiler_params=pltpu.CompilerParams(
            dimension_semantics=("parallel",)),
    )(xp, w1bd, b1bd, w2bd, b2bd)

    out = out.reshape(Bpk_pad * P, Gf)     # free unpack of P rows per 128-lane row
    if Gf != F:
        out = out[:, :F]
    if Bpk_pad * P != B:
        out = out[:B]
    return out


def init_params(key, state_size, feature_size, hidden=HIDDEN):
    """Deterministic synthetic init (PyTorch-style uniform bounds), weights pre-transposed."""
    k1, k2, k3, k4 = jax.random.split(key, 4)
    bound1 = 1.0 / jnp.sqrt(state_size)
    bound2 = 1.0 / jnp.sqrt(hidden)
    w1 = jax.random.uniform(k1, (state_size, hidden), jnp.float32, -bound1, bound1)
    b1 = jax.random.uniform(k2, (1, hidden), jnp.float32, -bound1, bound1)
    w2 = jax.random.uniform(k3, (hidden, feature_size), jnp.float32, -bound2, bound2)
    b2 = jax.random.uniform(k4, (1, feature_size), jnp.float32, -bound2, bound2)
    return w1, b1, w2, b2


def reference_forward(x, w1, b1, w2, b2):
    h = jnp.maximum(x @ w1 + b1, 0.0)
    return jnp.maximum(h @ w2 + b2, 0.0)


if __name__ == "__main__":
    # CartPole-like sizes: state_size=4, feature_size=32.
    state_size, feature_size = 4, 32

    key = jax.random.PRNGKey(0)
    kx, kp, kx2 = jax.random.split(key, 3)
    w1, b1, w2, b2 = init_params(kp, state_size, feature_size)

    # Case 1: small inference batch (single grid step, no feature slice needed).
    batch = 8
    x = jax.random.normal(kx, (batch, state_size), jnp.float32)
    out = jax.block_until_ready(dqn_forward(x, w1, b1, w2, b2))
    ref = reference_forward(x, w1, b1, w2, b2)
    assert out.shape == (batch, feature_size)
    assert jnp.allclose(out, ref, atol=1e-5, rtol=1e-5), "mismatch vs reference (B=8)"

    # Case 2: ragged batch with a multi-step parallel grid (exercises batch
    # padding, 4-rows-per-lane packing/unpacking, and tile-divisibility logic).
    batch2 = 50
    x2 = jax.random.normal(kx2, (batch2, state_size), jnp.float32)
    out2 = jax.block_until_ready(dqn_forward(x2, w1, b1, w2, b2, batch_tile=16))
    ref2 = reference_forward(x2, w1, b1, w2, b2)
    assert out2.shape == (batch2, feature_size)
    assert jnp.allclose(out2, ref2, atol=1e-5, rtol=1e-5), "mismatch vs reference (B=50)"

    print("KERNEL_OK")
</pallas_src>

<mosaic_0001>
module attributes {stable_mosaic.version = 11 : i64} {
  func.func @dqn_mlp_kernel(%arg0: i32, %arg1: memref<8x16xf32, #tpu.memory_space<vmem>>, %arg2: memref<16x128xf32, #tpu.memory_space<vmem>>, %arg3: memref<1x128xf32, #tpu.memory_space<vmem>>, %arg4: memref<128x128xf32, #tpu.memory_space<vmem>>, %arg5: memref<1x128xf32, #tpu.memory_space<vmem>>, %arg6: memref<8x128xf32, #tpu.memory_space<vmem>>) attributes {dimension_semantics = [#tpu.dimension_semantics<parallel>], iteration_bounds = array<i64: 1>, scalar_prefetch = 0 : i64, scratch_operands = 0 : i64, tpu.core_type = #tpu.core_type<tc>, window_params = [{transform_indices = @transform_0, window_bounds = array<i64: 8, 16>}, {pipeline_mode = #tpu.pipeline_mode<synchronous>, transform_indices = @transform_1, window_bounds = array<i64: 16, 128>}, {pipeline_mode = #tpu.pipeline_mode<synchronous>, transform_indices = @transform_2, window_bounds = array<i64: 1, 128>}, {pipeline_mode = #tpu.pipeline_mode<synchronous>, transform_indices = @transform_3, window_bounds = array<i64: 128, 128>}, {pipeline_mode = #tpu.pipeline_mode<synchronous>, transform_indices = @transform_4, window_bounds = array<i64: 1, 128>}, {transform_indices = @transform_5, window_bounds = array<i64: 8, 128>}]} {
    %c0 = arith.constant 0 : index
    %c0_0 = arith.constant 0 : index
    %0 = vector.load %arg1[%c0, %c0_0] : memref<8x16xf32, #tpu.memory_space<vmem>>, vector<8x16xf32>
    %c0_1 = arith.constant 0 : index
    %c0_2 = arith.constant 0 : index
    %1 = vector.load %arg2[%c0_1, %c0_2] : memref<16x128xf32, #tpu.memory_space<vmem>>, vector<16x128xf32>
    %cst = arith.constant dense<0.000000e+00> : vector<8x128xf32>
    %2 = tpu.matmul %0, %1, %cst {dimension_numbers = #tpu.dot_dimension_numbers<[1], [0], [0], [1], [0, 0, 1, 1], [], []>} : vector<8x16xf32>, vector<16x128xf32>, vector<8x128xf32> -> vector<8x128xf32>
    %c0_3 = arith.constant 0 : index
    %c0_4 = arith.constant 0 : index
    %3 = vector.load %arg3[%c0_3, %c0_4] : memref<1x128xf32, #tpu.memory_space<vmem>>, vector<1x128xf32>
    %4 = vector.broadcast %3 : vector<1x128xf32> to vector<8x128xf32>
    %5 = arith.addf %2, %4 : vector<8x128xf32>
    %cst_5 = arith.constant 0.000000e+00 : f32
    %6 = vector.broadcast %cst_5 : f32 to vector<8x128xf32>
    %7 = arith.maximumf %5, %6 : vector<8x128xf32>
    %c0_6 = arith.constant 0 : index
    %c0_7 = arith.constant 0 : index
    %8 = vector.load %arg4[%c0_6, %c0_7] : memref<128x128xf32, #tpu.memory_space<vmem>>, vector<128x128xf32>
    %cst_8 = arith.constant dense<0.000000e+00> : vector<8x128xf32>
    %9 = tpu.matmul %7, %8, %cst_8 {dimension_numbers = #tpu.dot_dimension_numbers<[1], [0], [0], [1], [0, 0, 1, 1], [], []>} : vector<8x128xf32>, vector<128x128xf32>, vector<8x128xf32> -> vector<8x128xf32>
    %c0_9 = arith.constant 0 : index
    %c0_10 = arith.constant 0 : index
    %10 = vector.load %arg5[%c0_9, %c0_10] : memref<1x128xf32, #tpu.memory_space<vmem>>, vector<1x128xf32>
    %11 = vector.broadcast %10 : vector<1x128xf32> to vector<8x128xf32>
    %12 = arith.addf %9, %11 : vector<8x128xf32>
    %cst_11 = arith.constant 0.000000e+00 : f32
    %13 = vector.broadcast %cst_11 : f32 to vector<8x128xf32>
    %14 = arith.maximumf %12, %13 : vector<8x128xf32>
    %c0_12 = arith.constant 0 : index
    %c0_13 = arith.constant 0 : index
    %15 = vector.load %arg6[%c0_12, %c0_13] : memref<8x128xf32, #tpu.memory_space<vmem>>, vector<8x128xf32>
    tpu.vector_store %arg6[%c0_12, %c0_13], %14 {strides = array<i32>} : memref<8x128xf32, #tpu.memory_space<vmem>>, vector<8x128xf32>,
    return
  }
  func.func @transform_0(%arg0: i32) -> (i32, i32) {
    %c0_i32 = arith.constant 0 : i32
    %c0_i32_0 = arith.constant 0 : i32
    return %arg0, %c0_i32 : i32, i32
  }
  func.func @transform_1(%arg0: i32) -> (i32, i32) {
    %c0_i32 = arith.constant 0 : i32
    %c0_i32_0 = arith.constant 0 : i32
    %c0_i32_1 = arith.constant 0 : i32
    return %c0_i32, %c0_i32_0 : i32, i32
  }
  func.func @transform_2(%arg0: i32) -> (i32, i32) {
    %c0_i32 = arith.constant 0 : i32
    %c0_i32_0 = arith.constant 0 : i32
    %c0_i32_1 = arith.constant 0 : i32
    return %c0_i32, %c0_i32_0 : i32, i32
  }
  func.func @transform_3(%arg0: i32) -> (i32, i32) {
    %c0_i32 = arith.constant 0 : i32
    %c0_i32_0 = arith.constant 0 : i32
    %c0_i32_1 = arith.constant 0 : i32
    return %c0_i32, %c0_i32_0 : i32, i32
  }
  func.func @transform_4(%arg0: i32) -> (i32, i32) {
    %c0_i32 = arith.constant 0 : i32
    %c0_i32_0 = arith.constant 0 : i32
    %c0_i32_1 = arith.constant 0 : i32
    return %c0_i32, %c0_i32_0 : i32, i32
  }
  func.func @transform_5(%arg0: i32) -> (i32, i32) {
    %c0_i32 = arith.constant 0 : i32
    %c0_i32_0 = arith.constant 0 : i32
    return %arg0, %c0_i32 : i32, i32
  }
}

</mosaic_0001>

<bundles_post_ra>
// kernel: dqn_forward.1
= control target key start
LH: loop header
LB: loop body
LE: loop exit
PB: predicated region body
PF: predicated region fallthrough
CT: control target
= control target key end

     0   :  { %v271_v0 = vmov 0.0   ;;  %vm272_vm0 = vmmov 0   ;;  %vm30_vm1 = vcmask 130048   ;;  %s371_s1 = inlined_call_operand.vmem [shape: f32[16,128], index: 1, kind: input, shape index: {}]   ;;  %s372_s0 = inlined_call_operand.vmem [shape: f32[8,16], index: 0, kind: input, shape index: {}]   ;;  %s373_s3 = inlined_call_operand.vmem [shape: f32[128,128], index: 3, kind: input, shape index: {}]   ;;  %s374_s2 = inlined_call_operand.vmem [shape: f32[1,128], index: 2, kind: input, shape index: {}]   ;;  %s375_s4 = inlined_call_operand.vmem [shape: f32[1,128], index: 4, kind: input, shape index: {}]   ;;  %s376_s5 = inlined_call_operand.vmem [shape: f32[8,128], index: 5, kind: output, shape index: {}]  }
   0x1   :  { %227 = vmatprep.subr.mxu0 %v271_v0  ;;  %v22_v1 = vld [vmem:[%s371_s1 + $0x8] sm:$0xff]  ;;  %v21_v2 = vld [vmem:[%s371_s1] sm:$0xff]  ;;  %231 = vmatprep.mubr.msk.f32.mxu0 %vm272_vm0, %v271_v0  ;;  %v120_v4 = vld [vmem:[%s373_s3 + $0x78] sm:$0xff] }
   0x2   :  { %228 = vmatpush3.msra.mxu0 %v22_v1  ;;  %v20_v3 = vld [vmem:[%s372_s0] sm:$0xff]  ;;  %234 = vmatprep.subr.mxu1 %v271_v0  ;;  %v119_v5 = vld [vmem:[%s373_s3 + $0x70] sm:$0xff]  ;;  %v118_v6 = vld [vmem:[%s373_s3 + $0x68] sm:$0xff] }
   0x3   :  { %229 = vmatprep.subr.mxu0 %v271_v0  ;;  %235 = vmatpush3.msra.mxu1 %v120_v4  ;;  %v117_v7 = vld [vmem:[%s373_s3 + $0x60] sm:$0xff]  ;;  %v116_v8 = vld [vmem:[%s373_s3 + $0x58] sm:$0xff]  ;;  %v115_v9 = vld [vmem:[%s373_s3 + $0x50] sm:$0xff] }
   0x4   :  { %230 = vmatpush3.msra.mxu0 %v21_v2  ;;  %236 = vmatprep.subr.mxu1 %v271_v0  ;;  %v114_v10 = vld [vmem:[%s373_s3 + $0x48] sm:$0xff]  ;;  %v113_v11 = vld [vmem:[%s373_s3 + $0x40] sm:$0xff]  ;;  %v112_v12 = vld [vmem:[%s373_s3 + $0x38] sm:$0xff] }
   0x5   :  { %232 = vmatmul.mubr.msk.f32.vlgmr.msra.gmra.mxu0 %vm30_vm1, %v20_v3  ;;  %237 = vmatpush3.msra.mxu1 %v119_v5  ;;  %v111_v13 = vld [vmem:[%s373_s3 + $0x30] sm:$0xff]  ;;  %v110_v14 = vld [vmem:[%s373_s3 + $0x28] sm:$0xff]  ;;  %v109_v15 = vld [vmem:[%s373_s3 + $0x20] sm:$0xff] }
   0x6   :  { %238 = vmatprep.subr.mxu1 %v271_v0  ;;  %266 = vmatprep.mubr.msk.f32.mxu1 %vm272_vm0, %v271_v0  ;;  %v108_v16 = vld [vmem:[%s373_s3 + $0x18] sm:$0xff]  ;;  %v107_v17 = vld [vmem:[%s373_s3 + $0x10] sm:$0xff]  ;;  %v106_v18 = vld [vmem:[%s373_s3 + $0x8] sm:$0xff] }
   0x7   :  { %239 = vmatpush3.msra.mxu1 %v118_v6  ;;  %v105_v19 = vld [vmem:[%s373_s3] sm:$0xff] }
   0x8   :  { %240 = vmatprep.subr.mxu1 %v271_v0  ;;  %v204_v20 = vld [vmem:[%s374_s2] ss:$0 sm:$0xff] }
   0x9   :  { %241 = vmatpush3.msra.mxu1 %v117_v7  ;;  %v206_v25 = vld [vmem:[%s375_s4] ss:$0 sm:$0xff] }
   0xa   :  { %242 = vmatprep.subr.mxu1 %v271_v0 }
   0xb   :  { %243 = vmatpush3.msra.mxu1 %v116_v8 }
   0xc   :  { %244 = vmatprep.subr.mxu1 %v271_v0 }
   0xd   :  { %245 = vmatpush3.msra.mxu1 %v115_v9 }
   0xe   :  { %246 = vmatprep.subr.mxu1 %v271_v0 }
   0xf   :  { %247 = vmatpush3.msra.mxu1 %v114_v10 }
  0x10   :  { %248 = vmatprep.subr.mxu1 %v271_v0 }
  0x11   :  { %249 = vmatpush3.msra.mxu1 %v113_v11 }
  0x12   :  { %250 = vmatprep.subr.mxu1 %v271_v0 }
  0x13   :  { %251 = vmatpush3.msra.mxu1 %v112_v12 }
  0x14   :  { %252 = vmatprep.subr.mxu1 %v271_v0 }
  0x15   :  { %253 = vmatpush3.msra.mxu1 %v111_v13 }
  0x16   :  { %254 = vmatprep.subr.mxu1 %v271_v0 }
  0x17   :  { %255 = vmatpush3.msra.mxu1 %v110_v14 }
  0x18   :  { %256 = vmatprep.subr.mxu1 %v271_v0 }
  0x19   :  { %257 = vmatpush3.msra.mxu1 %v109_v15 }
  0x1a   :  { %258 = vmatprep.subr.mxu1 %v271_v0 }
  0x1b   :  { %259 = vmatpush3.msra.mxu1 %v108_v16 }
  0x1c   :  { %260 = vmatprep.subr.mxu1 %v271_v0 }
  0x1d   :  { %261 = vmatpush3.msra.mxu1 %v107_v17 }
  0x1e   :  { %262 = vmatprep.subr.mxu1 %v271_v0 }
  0x1f   :  { %263 = vmatpush3.msra.mxu1 %v106_v18 }
  0x20   :  { %264 = vmatprep.subr.mxu1 %v271_v0 }
  0x21   :  { %265 = vmatpush3.msra.mxu1 %v105_v19 }
  0xc5   :  { %v100_v21 = vpop.f32.mrf.mxu0 }
  0xc6   :  { %v101_v22 = vadd.f32 %v204_v20, %v100_v21 }
  0xc7   :  { %v233_v23 = vpop.f32.mrf.mxu0 }
  0xc8   :  { %v104_v24 = vmax.f32 %v101_v22, 0.0 }
  0xca   :  { %267 = vmatmul.mubr.f32.vlgmr.msra.gmra.mxu1 %v104_v24 }
 0x18a   :  { %v194_v26 = vpop.f32.mrf.mxu1 }
 0x18b   :  { %v195_v27 = vadd.f32 %v206_v25, %v194_v26 }
 0x18c   :  { %v268_v28 = vpop.f32.mrf.mxu1 }
 0x18d   :  { %v198_v29 = vmax.f32 %v195_v27, 0.0 }
 0x18f   :  { %199 = vst [vmem:[%s376_s5] sm:$0xff] %v198_v29 }

</bundles_post_ra>
